<compile_context>
chip_gen: v7x
topology: tpu7x:2x2x1
jax: 0.10.0
libtpu: 0.0.40
codegen_flags: <defaults>
</compile_context>

<pallas_src>
import jax
import jax.numpy as jnp
from jax.experimental import pallas as pl
from jax.experimental.pallas import tpu as pltpu


def _round_up(x, m):
    return ((x + m - 1) // m) * m


def _mlp_kernel(x_ref, w_ref, b_ref, o_ref):
    """One batch tile.

    x_ref: (D_pad, TB)    f32 VMEM -- x transposed: contraction on sublanes,
                                      batch on lanes.
    w_ref: (C, D_pad, TB) f32 VMEM -- weight, pre-broadcast along the lane axis.
    b_ref: (C,)           f32 SMEM -- bias scalars.
    o_ref: (C, TB)        f32 VMEM -- transposed, lane-dense output tile.
    """
    x = x_ref[...]
    num_classes = o_ref.shape[0]
    for c in range(num_classes):                       # static unroll; C is tiny (default 1)
        prod = x * w_ref[c]                            # VPU elementwise
        acc = jnp.sum(prod, axis=0, keepdims=True)     # XLU sublane reduce -> (1, TB)
        out = jax.nn.sigmoid(acc + b_ref[c])           # EUP sigmoid + scalar bias
        o_ref[pl.ds(c, 1), :] = out.astype(o_ref.dtype)


def mlp_forward(x, weight_t, bias, *, max_lane_tile=512):
    """sigmoid(x @ weight_t + bias).

    x:        (B, D) f32
    weight_t: (D, C) f32  (transpose of the PyTorch nn.Linear weight)
    bias:     (C,)   f32
    returns   (B, C) f32
    """
    B, D = x.shape
    Dw, C = weight_t.shape
    assert D == Dw and bias.shape == (C,)

    LANE, SUBLANE = 128, 8
    d_pad = _round_up(D, SUBLANE)          # contraction dim on sublanes
    b_min = _round_up(B, LANE)             # batch dim on lanes (lane-dense output)
    tb = min(max_lane_tile, b_min)         # batch tile (multiple of 128)
    b_pad = _round_up(b_min, tb)
    nb = b_pad // tb

    # Layout plumbing in the XLA wrapper (cheap): transpose + zero-pad so batch
    # sits on the lane axis and D on the sublane axis; broadcast the weight
    # column(s) across lanes so the kernel is a pure VPU multiply.
    x_t = jnp.zeros((d_pad, b_pad), x.dtype).at[:D, :B].set(x.T)
    w_pad = jnp.zeros((d_pad, C), weight_t.dtype).at[:D, :].set(weight_t)
    w_lane = jnp.broadcast_to(w_pad.T[:, :, None], (C, d_pad, tb))

    out_t = pl.pallas_call(
        _mlp_kernel,
        out_shape=jax.ShapeDtypeStruct((C, b_pad), x.dtype),
        grid=(nb,),
        in_specs=[
            pl.BlockSpec((d_pad, tb), lambda i: (0, i)),          # x tile
            pl.BlockSpec((C, d_pad, tb), lambda i: (0, 0, 0)),    # weight (resident)
            pl.BlockSpec(memory_space=pltpu.MemorySpace.SMEM),    # bias scalars
        ],
        out_specs=pl.BlockSpec((C, tb), lambda i: (0, i)),
        compiler_params=pltpu.CompilerParams(
            dimension_semantics=("parallel",)),
    )(x_t, w_lane, bias)

    return out_t[:, :B].T                               # back to (B, C)


if __name__ == "__main__":
    # Module defaults: input_class=10, num_classes=1; small batch.
    input_class, num_classes, batch = 10, 1, 8

    key = jax.random.PRNGKey(0)
    kx, kb, kw, kx2 = jax.random.split(key, 4)

    # PyTorch init: fc1.weight = 0 (init.constant_); fc1.bias ~ U(-1/sqrt(D), 1/sqrt(D)).
    weight_t = jnp.zeros((input_class, num_classes), dtype=jnp.float32)  # = W_pt.T
    bound = 1.0 / (input_class ** 0.5)
    bias = jax.random.uniform(kb, (num_classes,), minval=-bound, maxval=bound,
                              dtype=jnp.float32)
    x = jax.random.normal(kx, (batch, input_class), dtype=jnp.float32)

    out = jax.block_until_ready(mlp_forward(x, weight_t, bias))
    ref = jax.nn.sigmoid(x @ weight_t + bias[None, :])
    assert out.shape == (batch, num_classes)
    assert jnp.allclose(out, ref, atol=1e-6, rtol=1e-6), "mismatch vs reference (default config)"

    # Extra correctness check: non-zero weights, 2 classes, batch big enough to
    # exercise padding and a multi-tile (nb > 1) grid.
    B2, C2 = 640, 2
    w2 = jax.random.normal(kw, (input_class, C2), dtype=jnp.float32)
    b2 = jax.random.uniform(kb, (C2,), minval=-bound, maxval=bound, dtype=jnp.float32)
    x2 = jax.random.normal(kx2, (B2, input_class), dtype=jnp.float32)
    out2 = jax.block_until_ready(mlp_forward(x2, w2, b2))
    ref2 = jax.nn.sigmoid(x2 @ w2 + b2[None, :])
    assert out2.shape == (B2, C2)
    assert jnp.allclose(out2, ref2, atol=1e-5, rtol=1e-5), "mismatch vs reference (tiled config)"

    print("KERNEL_OK")
</pallas_src>

<mosaic_0001>
module attributes {stable_mosaic.version = 11 : i64} {
  func.func @_mlp_kernel(%arg0: i32, %arg1: memref<16x128xf32, #tpu.memory_space<vmem>>, %arg2: memref<1x16x128xf32, #tpu.memory_space<vmem>>, %arg3: memref<1xf32, #tpu.memory_space<smem>>, %arg4: memref<1x128xf32, #tpu.memory_space<vmem>>) attributes {dimension_semantics = [#tpu.dimension_semantics<parallel>], iteration_bounds = array<i64: 1>, scalar_prefetch = 0 : i64, scratch_operands = 0 : i64, tpu.core_type = #tpu.core_type<tc>, window_params = [{transform_indices = @transform_0, window_bounds = array<i64: 16, 128>}, {pipeline_mode = #tpu.pipeline_mode<synchronous>, transform_indices = @transform_1, window_bounds = array<i64: 1, 16, 128>}, {transform_indices = @transform_2, window_bounds = array<i64: 1>}, {transform_indices = @transform_3, window_bounds = array<i64: 1, 128>}]} {
    %c0 = arith.constant 0 : index
    %c0_0 = arith.constant 0 : index
    %0 = vector.load %arg1[%c0, %c0_0] : memref<16x128xf32, #tpu.memory_space<vmem>>, vector<16x128xf32>
    %c0_1 = arith.constant 0 : index
    %c0_2 = arith.constant 0 : index
    %c0_3 = arith.constant 0 : index
    %1 = vector.load %arg2[%c0_1, %c0_2, %c0_3] : memref<1x16x128xf32, #tpu.memory_space<vmem>>, vector<1x16x128xf32>
    %2 = vector.shape_cast %1 : vector<1x16x128xf32> to vector<16x128xf32>
    %3 = arith.mulf %0, %2 : vector<16x128xf32>
    %cst = arith.constant dense<0.000000e+00> : vector<128xf32>
    %4 = vector.multi_reduction <add>, %3, %cst [0] : vector<16x128xf32> to vector<128xf32>
    %5 = vector.shape_cast %4 : vector<128xf32> to vector<1x128xf32>
    %c0_4 = arith.constant 0 : index
    %6 = memref.load %arg3[%c0_4] : memref<1xf32, #tpu.memory_space<smem>>
    %7 = vector.broadcast %6 : f32 to vector<1x128xf32>
    %8 = arith.addf %5, %7 : vector<1x128xf32>
    %9 = arith.negf %8 : vector<1x128xf32>
    %10 = math.exp %9 : vector<1x128xf32>
    %cst_5 = arith.constant 1.000000e+00 : f32
    %11 = vector.broadcast %cst_5 : f32 to vector<1x128xf32>
    %12 = arith.addf %11, %10 : vector<1x128xf32>
    %13 = arith.divf %11, %12 : vector<1x128xf32>
    %c0_6 = arith.constant 0 : index
    %c0_7 = arith.constant 0 : index
    %14 = vector.load %arg4[%c0_6, %c0_7] : memref<1x128xf32, #tpu.memory_space<vmem>>, vector<1x128xf32>
    tpu.vector_store %arg4[%c0_6, %c0_7], %13 {strides = array<i32>} : memref<1x128xf32, #tpu.memory_space<vmem>>, vector<1x128xf32>,
    return
  }
  func.func @transform_0(%arg0: i32) -> (i32, i32) {
    %c0_i32 = arith.constant 0 : i32
    %c0_i32_0 = arith.constant 0 : i32
    return %c0_i32, %arg0 : i32, i32
  }
  func.func @transform_1(%arg0: i32) -> (i32, i32, i32) {
    %c0_i32 = arith.constant 0 : i32
    %c0_i32_0 = arith.constant 0 : i32
    %c0_i32_1 = arith.constant 0 : i32
    %c0_i32_2 = arith.constant 0 : i32
    return %c0_i32, %c0_i32_0, %c0_i32_1 : i32, i32, i32
  }
  func.func @transform_2(%arg0: i32) -> i32 {
    %c0_i32 = arith.constant 0 : i32
    %c0_i32_0 = arith.constant 0 : i32
    return %c0_i32 : i32
  }
  func.func @transform_3(%arg0: i32) -> (i32, i32) {
    %c0_i32 = arith.constant 0 : i32
    %c0_i32_0 = arith.constant 0 : i32
    return %c0_i32, %arg0 : i32, i32
  }
}

</mosaic_0001>

<bundles_post_ra>
// kernel: tpu_custom_call.1
= control target key start
LH: loop header
LB: loop body
LE: loop exit
PB: predicated region body
PF: predicated region fallthrough
CT: control target
= control target key end

     0   :  { %9 = vsyncpa [#allocation4], 0  ;;  %s229_s0 = inlined_call_operand.hbm [shape: f32[16,128], index: 0, kind: input, shape index: {}]   ;;  %s230_s1 = inlined_call_operand.hbm [shape: f32[1,16,128], index: 1, kind: input, shape index: {}]   ;;  %s231_s2 = inlined_call_operand.<no memory space> [shape: f32[1], index: 2, kind: input, shape index: {}]   ;;  %s232_s3 = inlined_call_operand.hbm [shape: f32[1,128], index: 3, kind: output, shape index: {}]  }
   0x1   :  { %10 = vsyncpa [#allocation7], 0 }
   0x2   :  { %11 = vsyncpa [#allocation5], 0  ;;  %s165_s12 = smov [#allocation3]   ;;  %s93_s16 = scalar_lea.hbm %s229_s0, 256 }
   0x3   :  { %s17_s13 = sshll.u32 %s165_s12, 4  ;;  %p94_p0 = scmp.ne.s32.totalorder %s229_s0, %s93_s16  ;;  %s18_s13 = int_to_ptr.vmem [resolvable:$true] %s17_s13 }
   0x4   :  { %p97_p1 = scmp.lt.u32.totalorder %s93_s16, %s229_s0 }
   0x6   :  { %p99_p2 = pnand %p97_p1, %p94_p0 }
   0x8   :  { %102 = shalt.err (!%p99_p2)
}
   0x9   :  { %s103_s21 = scalar_lea.vmem %s18_s13, 256  ;;  %p108_p4 = scmp.lt.s32.totalorder %s18_s13, %s18_s13 }
   0xa   :  { %p104_p3 = scmp.ne.s32.totalorder %s18_s13, %s103_s21  ;;  %p109_p5 = scmp.lt.s32.totalorder %s103_s21, %s103_s21 }
   0xc   :  { %p110_p6 = por %p109_p5, %p108_p4 }
   0xe   :  { %p111_p7 = pnand %p110_p6, %p104_p3 }
  0x10   :  { %114 = shalt.err (!%p111_p7)
}
  0x11   :  { %s166_s22 = smov 128   ;;  %s167_s23 = smov 8  }
  0x12   :  { %23 = dma.hbm_to_vmem [thread:$0]  %s229_s0, 256, %s18_s13, [#allocation4], %s166_s22, %s166_s22, %s167_s23  }
  0x13   :  { %s168_s26 = smov [#allocation6]   ;;  %s115_s30 = scalar_lea.hbm %s230_s1, 256 }
  0x14   :  { %s29_s27 = sshll.u32 %s168_s26, 4  ;;  %p116_p8 = scmp.ne.s32.totalorder %s230_s1, %s115_s30  ;;  %s30_s27 = int_to_ptr.vmem [resolvable:$true] %s29_s27 }
  0x15   :  { %p119_p9 = scmp.lt.u32.totalorder %s115_s30, %s230_s1 }
  0x17   :  { %p121_p10 = pnand %p119_p9, %p116_p8 }
  0x19   :  { %124 = shalt.err (!%p121_p10)
}
  0x1a   :  { %s125_s8 = scalar_lea.vmem %s30_s27, 256  ;;  %p130_p12 = scmp.lt.s32.totalorder %s30_s27, %s30_s27 }
  0x1b   :  { %p126_p11 = scmp.ne.s32.totalorder %s30_s27, %s125_s8  ;;  %p131_p13 = scmp.lt.s32.totalorder %s125_s8, %s125_s8 }
  0x1d   :  { %p132_p0 = por %p131_p13, %p130_p12 }
  0x1f   :  { %p133_p1 = pnand %p132_p0, %p126_p11 }
  0x21   :  { %136 = shalt.err (!%p133_p1)
}
  0x22   :  { %35 = dma.hbm_to_vmem [thread:$0]  %s230_s1, 256, %s30_s27, [#allocation7], %s166_s22, %s166_s22, %s167_s23  }
  0x23   :  { %159 = dma.done.wait [#allocation4], 256  }
  0x24   :  { %160 = vsyncadd [#allocation4], 4294967040 }
  0x25   :  { %161 = dma.done.wait [#allocation7], 256  }
  0x26   :  { %162 = vsyncadd [#allocation7], 4294967040  ;;  %v44_v0 = vld [vmem:[#allocation3] sm:$0xff]  ;;  %v45_v1 = vld [vmem:[#allocation3 + $0x8] sm:$0xff]  ;;  %v58_v12 = vstv %s231_s2  ;;  %s169_s1 = smov [#allocation8]  }
  0x27   :  { %v46_v2 = vld [vmem:[#allocation6] sm:$0xff]  ;;  %v47_v3 = vld [vmem:[#allocation6 + $0x8] sm:$0xff]  ;;  %s73_s12 = sshll.u32 %s169_s1, 4  ;;  %s74_s12 = int_to_ptr.vmem [resolvable:$true] %s73_s12 }
  0x28   :  { %v48_v4 = vmul.f32 %v46_v2, %v44_v0  ;;  %v49_v5 = vmul.f32 %v47_v3, %v45_v1  ;;  %s137_s13 = scalar_lea.vmem %s74_s12, 16  ;;  %s141_s14 = scalar_lea.vmem %s74_s12, 32 }
  0x29   :  { %p138_p2 = scmp.ne.s32.totalorder %s74_s12, %s137_s13  ;;  %p142_p3 = scmp.lt.s32.totalorder %s74_s12, %s74_s12 }
  0x2a   :  { %v50_v6 = vadd.f32 %v49_v5, %v48_v4  ;;  %p143_p4 = scmp.lt.s32.totalorder %s141_s14, %s137_s13 }
  0x2c   :  { %v51_v7 = vrot.slane %v50_v6, 4  ;;  %p144_p5 = por %p143_p4, %p142_p3 }
  0x2e   :  { %v52_v8 = vadd.f32 %v51_v7, %v50_v6  ;;  %p145_p6 = pnand %p144_p5, %p138_p2 }
  0x30   :  { %v53_v9 = vrot.slane %v52_v8, 2 }
  0x32   :  { %v54_v10 = vadd.f32 %v53_v9, %v52_v8 }
  0x34   :  { %v55_v11 = vrot.slane %v54_v10, 1 }
  0x36   :  { %v56_v13 = vadd.f32 %v55_v11, %v54_v10 }
  0x38   :  { %v59_v14 = vadd.f32 %v58_v12, %v56_v13 }
  0x3a   :  { %v83_v15 = vmul.f32 -1.442695, %v59_v14 }
  0x3c   :  { %89 = vpow2.f32 %v83_v15 }
  0x46   :  { %v90_v16 = vpop.eup %89 }
  0x47   :  { %v63_v17 = vadd.f32 1.0, %v90_v16 }
  0x49   :  { %91 = vrcp.f32 %v63_v17 }
  0x53   :  { %v92_v18 = vpop.eup %91 }
  0x54   :  { %66 = vst [vmem:[#allocation8] sm:$0x1] %v92_v18 }
  0x55   :  { %148 = shalt.err (!%p145_p6)
}
  0x56   :  { %s149_s16 = scalar_lea.hbm %s232_s3, 16 }
  0x57   :  { %p150_p7 = scmp.ne.s32.totalorder %s232_s3, %s149_s16  ;;  %p153_p8 = scmp.lt.u32.totalorder %s149_s16, %s232_s3 }
  0x59   :  { %p155_p9 = pnand %p153_p8, %p150_p7 }
  0x5b   :  { %158 = shalt.err (!%p155_p9)
}
  0x5c   :  { %76 = dma.vmem_to_hbm [thread:$0]  %s74_s12, 16, %s232_s3, [#allocation5]  }
  0x5d   :  { %163 = dma.done.wait [#allocation5], 16  }
  0x5e   :  { %164 = vsyncadd [#allocation5], 4294967280 }
  0x5f   :  { %80 = vsyncpa [#allocation4], 1 }
  0x60   :  { %81 = vsyncpa [#allocation7], 1 }
  0x61   :  { %82 = vsyncpa [#allocation5], 1 }

</bundles_post_ra>
